<compile_context>
chip_gen: v7x
topology: tpu7x:2x2x1
jax: 0.10.0
libtpu: 0.0.40
codegen_flags: <defaults>
</compile_context>

<pallas_src>
import math

import jax
import jax.numpy as jnp
from jax.experimental import pallas as pl
from jax.experimental.pallas import tpu as pltpu


def _hadamard_matrix(n: int) -> jnp.ndarray:
    """Sylvester construction of the (unnormalized) n x n Hadamard matrix."""
    assert n & (n - 1) == 0, "e_features must be a power of two for SRHT"
    h = jnp.array([[1.0]], dtype=jnp.float32)
    while h.shape[0] < n:
        h = jnp.block([[h, h], [h, -h]])
    return h


def _round_up(x: int, m: int) -> int:
    return ((x + m - 1) // m) * m


def _craft_kernel(x_ref, w_ref, o_ref):
    # out tile (D, TB) = W_fused^T (D, F_in) @ x^T (F_in, TB).
    # All f32 operands, f32 MXU accumulation; the SRHT/CRAFT scale is already
    # folded into the weight, so the store is the whole epilogue.
    o_ref[...] = jnp.dot(w_ref[...], x_ref[...],
                         preferred_element_type=jnp.float32)


def fold_craft_params(w_up, signs, h_sub, d_features):
    """One-time parameter prep (glue):
       fold the SRHT Rademacher diagonal, the Hadamard shuffled subsample and
       the 1/(sqrt(E)*sqrt(D)) scale into a single f32 (D, F_in) weight."""
    f_in, e = w_up.shape
    scale = 1.0 / (math.sqrt(e) * math.sqrt(d_features))
    w_fused = jnp.matmul(w_up * signs.reshape(1, e), h_sub,
                         precision='highest') * scale            # (F_in, D)
    return jnp.asarray(w_fused.T, dtype=jnp.float32)              # (D, F_in)


def craft_encoder_forward(x, w_fused_t, *, batch_tile=1024,
                          return_batch_major=False):
    """Fused CRAFT encoder forward.

    x:         (N, F_in) f32, batch-major (module-native layout).
    w_fused_t: (D, F_in) f32 fused weight from fold_craft_params.

    Returns (D, N) by default — the lane-dense, cheapest-writeback layout the
    kernel produces.  Pass return_batch_major=True for the module-native
    (N, D) (adds one XLA transpose pass over the small output).
    """
    n, f_in = x.shape
    d = w_fused_t.shape[0]

    # Layout plumbing: the kernel consumes feature-major x so both the x tiles
    # and the output tiles are lane-dense (batch on the 128-lane axis).
    # Producers that can emit (F_in, N) directly should do so and skip this.
    x_t = jnp.transpose(x)                                        # (F_in, N)

    # Tile selection: multiple of 256 (full MXU rows on v6e/v7x, 2x128 on
    # v5e), shrunk for small batches so the 'parallel' grid keeps >= 2 steps
    # (v7x megacore: 2 TensorCores share the grid).
    bt = min(batch_tile, max(256, _round_up(max(n // 2, 1), 256)))
    n_pad = _round_up(n, bt)
    if n_pad != n:   # ragged batch: zero-pad the lane axis (rare; sliced off)
        x_t = jnp.pad(x_t, ((0, 0), (0, n_pad - n)))

    out = pl.pallas_call(
        _craft_kernel,
        out_shape=jax.ShapeDtypeStruct((d, n_pad), jnp.float32),
        grid=(n_pad // bt,),
        in_specs=[
            pl.BlockSpec((f_in, bt), lambda i: (0, i)),   # x^T batch tile
            pl.BlockSpec((d, f_in), lambda i: (0, 0)),    # fused weight (resident)
        ],
        out_specs=pl.BlockSpec((d, bt), lambda i: (0, i)),
        compiler_params=pltpu.CompilerParams(
            dimension_semantics=("parallel",)),
    )(x_t, w_fused_t)

    if n_pad != n:
        out = out[:, :n]
    if return_batch_major:
        out = out.T
    return out


def reference_forward(x, w_up, signs, h_sub, e_features, d_features):
    scale = 1.0 / (math.sqrt(e_features) * math.sqrt(d_features))
    h = jnp.matmul(x, w_up, precision='highest')
    h = h * signs
    return jnp.matmul(h, h_sub, precision='highest') * scale


if __name__ == "__main__":
    # Small shapes consistent with the module; batch sized so the 'parallel'
    # grid has two steps (keeps both v7x TensorCores busy at batch_tile=1024).
    N = 2048        # batch rows
    F_IN = 16       # raw input features
    E = 64          # e_features (up-projected dim, power of two for SRHT)
    D = 32          # d_features (down-projected dim)
    BATCH_TILE = 1024

    key = jax.random.PRNGKey(0)
    k_x, k_w, k_rad, k_perm = jax.random.split(key, 4)

    # Deterministic inputs / parameters.
    x = jax.random.normal(k_x, (N, F_IN), dtype=jnp.float32)
    w_up = jax.random.normal(k_w, (F_IN, E), dtype=jnp.float32) / math.sqrt(F_IN)

    # SRHT parameters (resample()-style init, done once, deterministically).
    rad = jax.random.rademacher(k_rad, (E,), dtype=jnp.float32)   # +/-1 signs
    perm = jax.random.permutation(k_perm, E)[:D]                  # shuffle=True
    H = _hadamard_matrix(E)                                       # (E, E)
    h_sub = H[:, perm]                                            # (E, D)

    # One-time fold: signs + Hadamard subsample + scale into one f32 weight.
    w_fused_t = fold_craft_params(w_up, rad, h_sub, D)             # (D, F_IN)

    out = craft_encoder_forward(x, w_fused_t, batch_tile=BATCH_TILE)
    out = jax.block_until_ready(out)

    ref = reference_forward(x, w_up, rad.reshape(1, E), h_sub, E, D)
    assert out.shape == (D, N)
    # All-f32 path; tolerance covers MXU multi-pass vs XLA precision deltas.
    assert jnp.allclose(out.T, ref, rtol=2e-2, atol=2e-2), \
        float(jnp.max(jnp.abs(out.T - ref)))

    print("KERNEL_OK")
</pallas_src>

<mosaic_0001>
module attributes {stable_mosaic.version = 11 : i64} {
  func.func @_craft_kernel(%arg0: i32, %arg1: memref<16x1024xf32, #tpu.memory_space<vmem>>, %arg2: memref<32x16xf32, #tpu.memory_space<vmem>>, %arg3: memref<32x1024xf32, #tpu.memory_space<vmem>>) attributes {dimension_semantics = [#tpu.dimension_semantics<parallel>], iteration_bounds = array<i64: 2>, scalar_prefetch = 0 : i64, scratch_operands = 0 : i64, tpu.core_type = #tpu.core_type<tc>, window_params = [{transform_indices = @transform_0, window_bounds = array<i64: 16, 1024>}, {pipeline_mode = #tpu.pipeline_mode<synchronous>, transform_indices = @transform_1, window_bounds = array<i64: 32, 16>}, {transform_indices = @transform_2, window_bounds = array<i64: 32, 1024>}]} {
    %c0 = arith.constant 0 : index
    %c0_0 = arith.constant 0 : index
    %0 = vector.load %arg2[%c0, %c0_0] : memref<32x16xf32, #tpu.memory_space<vmem>>, vector<32x16xf32>
    %c0_1 = arith.constant 0 : index
    %c0_2 = arith.constant 0 : index
    %1 = vector.load %arg1[%c0_1, %c0_2] : memref<16x1024xf32, #tpu.memory_space<vmem>>, vector<16x1024xf32>
    %cst = arith.constant dense<0.000000e+00> : vector<32x1024xf32>
    %2 = tpu.matmul %0, %1, %cst {dimension_numbers = #tpu.dot_dimension_numbers<[1], [0], [0], [1], [0, 0, 1, 1], [], []>} : vector<32x16xf32>, vector<16x1024xf32>, vector<32x1024xf32> -> vector<32x1024xf32>
    %c0_3 = arith.constant 0 : index
    %c0_4 = arith.constant 0 : index
    %3 = vector.load %arg3[%c0_3, %c0_4] : memref<32x1024xf32, #tpu.memory_space<vmem>>, vector<32x1024xf32>
    tpu.vector_store %arg3[%c0_3, %c0_4], %2 {strides = array<i32>} : memref<32x1024xf32, #tpu.memory_space<vmem>>, vector<32x1024xf32>,
    return
  }
  func.func @transform_0(%arg0: i32) -> (i32, i32) {
    %c0_i32 = arith.constant 0 : i32
    %c0_i32_0 = arith.constant 0 : i32
    return %c0_i32, %arg0 : i32, i32
  }
  func.func @transform_1(%arg0: i32) -> (i32, i32) {
    %c0_i32 = arith.constant 0 : i32
    %c0_i32_0 = arith.constant 0 : i32
    %c0_i32_1 = arith.constant 0 : i32
    return %c0_i32, %c0_i32_0 : i32, i32
  }
  func.func @transform_2(%arg0: i32) -> (i32, i32) {
    %c0_i32 = arith.constant 0 : i32
    %c0_i32_0 = arith.constant 0 : i32
    return %c0_i32, %arg0 : i32, i32
  }
}

</mosaic_0001>

<bundles_post_ra>
// kernel: tpu_custom_call.1
= control target key start
LH: loop header
LB: loop body
LE: loop exit
PB: predicated region body
PF: predicated region fallthrough
CT: control target
= control target key end

     0   :  { %7 = vsyncpa [#allocation3], 0  ;;  %s1157_s0 = inlined_call_operand.hbm [shape: f32[16,2048], index: 0, kind: input, shape index: {}]   ;;  %s1158_s1 = inlined_call_operand.vmem [shape: f32[32,16], index: 1, kind: input, shape index: {}]   ;;  %s1159_s2 = inlined_call_operand.hbm [shape: f32[32,2048], index: 2, kind: output, shape index: {}]  }
   0x1   :  { %9 = vsyncpa [#allocation3 + $0x1], 0 }
   0x2   :  { %10 = vsyncpa [#allocation4], 0 }
   0x3   :  { %12 = vsyncpa [#allocation4 + $0x1], 0  ;;  %s895_s9 = smov 0   ;;  %s897_s10 = smov 0  }
   0x4   :  { %s899_s11 = smov 0   ;;  %s901_s12 = smov 0  }
   0x5 LB: > { %s916_s13 = sadd.s32 4294967295, %s869_s12   ;;  %s672_s14 = sadd.s32 4294967294, %s869_s12   ;;  %s869_s12 = sphi %s901_s12, %s1173_s12   ;;  %s865_s11 = sphi %s899_s11, %s1172_s11   ;;  %s861_s10 = sphi %s897_s10, %s1171_s10   ;;  %s857_s9 = sphi %s895_s9, %s1170_s9  }
   0x6   : > { %s920_s15 = sadd.s32 1, %s869_s12   ;;  %s25_s16 = sadd.s32 1, %s865_s11 }
   0x7   : > { %s22_s17 = ssub.s32 %s869_s12, %s920_s15  ;;  %p32_p0 = scmp.ne.s32.totalorder %s865_s11, %s861_s10 }
   0x8   : > { %p23_p1 = scmp.eq.s32.totalorder %s22_s17, 0  ;;  %p33_p2 = scmp.eq.s32.totalorder %s869_s12, 0 }
   0x9   : > { %p38_p3 = scmp.ne.s32.totalorder %s861_s10, %s857_s9  ;;  %p39_p4 = scmp.eq.s32.totalorder %s916_s13, 0 }
   0xa   : > { %s932_s18 = scalar_select %p23_p1, %s865_s11, %s25_s16  }
   0xb   : > { %p934_p5 = por %p33_p2, %p32_p0  ;;  %p938_p6 = por %p39_p4, %p38_p3 }
   0xc   : > { %p83_p7 = scmp.eq.s32.totalorder %s916_s13, 1  ;;  %p89_p8 = scmp.eq.s32.totalorder %s672_s14, 1 }
   0xd   : > { %p732_p10 = scmp.lt.s32.totalorder %s869_s12, 2  ;;  %s112_s23 = sand.u32 1, %s865_s11  }
   0xe   : > { %p945_p11 = por %p83_p7, %p32_p0  ;;  %p949_p12 = por %p89_p8, %p38_p3 }
   0xf   : > { %s702_s24 = sshll.u32 %s869_s12, 10  ;;  %s675_s25 = sshll.u32 %s112_s23, 7 }
  0x10   : > { %s1163_s21 = scalar_select %p945_p11, 1, 0 }
  0x11   : > { %s1164_s22 = scalar_select %p949_p12, 1, 0 }
  0x12   : > { %s958_s28 = scalar_lea.hbm %s1157_s0, %s702_s24  ;;  %s116_s29 = scalar_lea.vmem [#allocation2], %s675_s25 }
  0x13   : > { %s123_s30 = sshll.u32 %s116_s29, 4  ;;  %p962_p13 = pnand %p732_p10, %p934_p5  ;;  %s966_s30 = int_to_ptr.vmem [resolvable:$true] %s123_s30 }
  0x14   : > { %s969_s4 = scalar_lea.sflag [#allocation3], %s112_s23  ;;  %s773_s5 = scalar_lea.hbm %s958_s28, 2048 }
  0x15   : > { %p774_p1 = scmp.ne.s32.totalorder %s958_s28, %s773_s5  ;;  %p775_p2 = pneg %p962_p13 }
  0x16   : > { %s778_s8 = scalar_lea.hbm %s1157_s0, 4096  ;;  %p779_p5 = scmp.lt.u32.totalorder %s958_s28, %s1157_s0 }
  0x17   : > { %p776_p3 = pnand %p775_p2, %p774_p1  ;;  %p780_p7 = scmp.lt.u32.totalorder %s778_s8, %s773_s5 }
  0x18   : > { %p782_p10 = scmp.lt.u32.totalorder %s773_s5, %s958_s28 }
  0x19   : > { %p777_p4 = pneg %p776_p3  ;;  %p781_p8 = por %p780_p7, %p779_p5 }
  0x1b   : > { %p783_p9 = por %p782_p10, %p781_p8 }
  0x1d   : > { %p784_p0 = pnand %p783_p9, %p777_p4 }
  0x1f   : > { %787 = shalt.err (!%p784_p0)
}
  0x20   : > { %s788_s17 = scalar_lea.vmem %s966_s30, 2048  ;;  %s871_s19 = smov [#allocation2]  }
  0x21   : > { %p789_p1 = scmp.ne.s32.totalorder %s966_s30, %s788_s17  ;;  %s793_s23 = sshll.u32 %s871_s19, 4  ;;  %s794_s23 = int_to_ptr.vmem [resolvable:$false] %s793_s23 }
  0x22   : > { %s795_s24 = scalar_lea.vmem %s794_s23, 4096  ;;  %p796_p11 = scmp.lt.s32.totalorder %s966_s30, %s794_s23 }
  0x23   : > { %p791_p3 = pnand %p789_p1, %p775_p2  ;;  %p797_p5 = scmp.lt.s32.totalorder %s795_s24, %s788_s17 }
  0x25   : > { %p792_p12 = pneg %p791_p3  ;;  %p798_p7 = por %p797_p5, %p796_p11 }
  0x27   : > { %p799_p8 = pnand %p798_p7, %p792_p12 }
  0x29   : > { %802 = shalt.err (!%p799_p8)
}
  0x2a   : > { %s872_s25 = smov 2048   ;;  %s873_s26 = smov 1024  }
  0x2b   : > { %s874_s27 = smov 64   ;;  %p131_p9 = scmp.lt.s32.totalorder %s869_s12, 3 }
  0x2c   : > { %727 = dma.hbm_to_vmem [thread:$0]  (!%p962_p13), %s958_s28, 2048, %s966_s30, %s969_s4, %s872_s25, %s873_s26, %s874_s27  }
  0x2d   : > { %p1166_p0 = scmp.ge.s32.totalorder %s869_s12, 1 }
  0x2f   : > { %p132_p2 = pnand %p1166_p0, %p131_p9 }
  0x30   : > { %s1001_s29 = sand.u32 (!%p132_p2), 1, %s861_s10  }
  0x31   : > { %135 = sbr.rel (%p132_p2) target bundleno = 323 (0x143), region = 28  ;;  %s679_s5 = sshll.u32 (!%p132_p2), %s1001_s29, 7 }
  0x32   : > { %s138_s6 = scalar_lea.sflag (!%p132_p2), [#allocation3], %s1001_s29  ;;  %s1005_s7 = scalar_lea.vmem (!%p132_p2), [#allocation2], %s679_s5 }
  0x38   : > { %848 = dma.done.wait (%p938_p6), %s138_s6, 2048  }
  0x39   : > { %850 = vsyncadd (%p938_p6), %s138_s6, 4294965248  ;;  %v875_v0 = vmov 0.0   ;;  %v169_v1 = vld [vmem:[%s1005_s7 + $0x8] sm:$0xff]  ;;  %v171_v3 = vld [vmem:[%s1005_s7 + $0x18] sm:$0xff]  ;;  %vm184_vm0 = vcmask 130048   ;;  %s680_s17 = sshll.u32 %s1001_s29, 8 }
  0x3a   : > { %261 = vmatprep.mubr.f32.mxu0 %v875_v0  ;;  %350 = vmatprep.mubr.f32.mxu1 %v875_v0  ;;  %v177_v2 = vld [vmem:[%s1005_s7 + $0x48] sm:$0xff]  ;;  %v179_v5 = vld [vmem:[%s1005_s7 + $0x58] sm:$0xff]  ;;  %v168_v6 = vld [vmem:[%s1005_s7] sm:$0xff]  ;;  %s1072_s19 = scalar_lea.vmem [#allocation5], %s680_s17  ;;  %s703_s23 = sshll.u32 %s916_s13, 10 }
  0x3b   : > { %v704_v4 = vpack.c.bf16 %v177_v2, %v169_v1  ;;  %v176_v7 = vld [vmem:[%s1005_s7 + $0x40] sm:$0xff]  ;;  %v708_v8 = vpack.c.bf16 %v179_v5, %v171_v3  ;;  %v170_v10 = vld [vmem:[%s1005_s7 + $0x10] sm:$0xff]  ;;  %v173_v14 = vld [vmem:[%s1005_s7 + $0x28] sm:$0xff]  ;;  %s599_s24 = sshll.u32 %s1072_s19, 4  ;;  %s1107_s27 = scalar_lea.hbm %s1159_s2, %s703_s23  ;;  %s1109_s24 = int_to_ptr.vmem [resolvable:$true] %s599_s24 }
  0x3c   : > { %v706_v9 = vpack.c.bf16 %v176_v7, %v168_v6  ;;  %v178_v11 = vld [vmem:[%s1005_s7 + $0x50] sm:$0xff]  ;;  %v164_v12 = vld [vmem:[%s1158_s1] sm:$0xff]  ;;  %v181_v15 = vld [vmem:[%s1005_s7 + $0x68] sm:$0xff]  ;;  %s586_s13 = scalar_lea.sflag [#allocation4], %s1001_s29  ;;  %s803_s5 = scalar_lea.vmem %s1109_s24, 4096 }
  0x3d   : > { %705 = vmatprep.subr.bf16.mxu0 %v704_v4  ;;  %v710_v13 = vpack.c.bf16 %v178_v11, %v170_v10  ;;  %v175_v16 = vld [vmem:[%s1005_s7 + $0x38] sm:$0xff]  ;;  %709 = vmatprep.subr.bf16.mxu1 %v708_v8  ;;  %v712_v17 = vpack.c.bf16 %v181_v15, %v173_v14  ;;  %v172_v19 = vld [vmem:[%s1005_s7 + $0x20] sm:$0xff]  ;;  %v174_v23 = vld [vmem:[%s1005_s7 + $0x30] sm:$0xff]  ;;  %p804_p6 = scmp.ne.s32.totalorder %s1109_s24, %s803_s5  ;;  %p1167_p11 = scmp.ne.s32.totalorder %s1163_s21, 0 }
  0x3e   : > { %707 = vmatpush1.bf16.msra.mxu0 %v706_v9  ;;  %v183_v18 = vld [vmem:[%s1005_s7 + $0x78] sm:$0xff]  ;;  %v180_v20 = vld [vmem:[%s1005_s7 + $0x60] sm:$0xff]  ;;  %v182_v24 = vld [vmem:[%s1005_s7 + $0x70] sm:$0xff]  ;;  %s876_s6 = smov [#allocation5]  }
  0x3f   : > { %711 = vmatpush1.bf16.msra.mxu1 %v710_v13  ;;  %v716_v21 = vpack.c.bf16 %v183_v18, %v175_v16  ;;  %v714_v22 = vpack.c.bf16 %v180_v20, %v172_v19  ;;  %713 = vmatprep.subr.bf16.mxu0 %v712_v17  ;;  %v718_v25 = vpack.c.bf16 %v182_v24, %v174_v23  ;;  %v165_v26 = vld [vmem:[%s1158_s1 + $0x8] sm:$0xff]  ;;  %v166_v27 = vld [vmem:[%s1158_s1 + $0x10] sm:$0xff]  ;;  %v167_v28 = vld [vmem:[%s1158_s1 + $0x18] sm:$0xff]  ;;  %p805_p12 = pnand %p804_p6, %p1167_p11  ;;  %s807_s7 = sshll.u32 %s876_s6, 4  ;;  %s808_s7 = int_to_ptr.vmem [resolvable:$false] %s807_s7 }
  0x40   : > { %s809_s20 = scalar_lea.vmem %s808_s7, 8192  ;;  %p810_p4 = scmp.lt.s32.totalorder %s1109_s24, %s808_s7 }
  0x41   : > { %681 = vmatmul.mubr.msk.f32.vlgmr.msra.gmra.mrb[0].mxu0 %vm184_vm0, %v164_v12  ;;  %717 = vmatprep.subr.bf16.mxu1 %v716_v21  ;;  %p806_p13 = pneg %p805_p12  ;;  %p811_p10 = scmp.lt.s32.totalorder %s809_s20, %s803_s5 }
  0x42   : > { %685 = vmatmul.mubr.msk.f32.vlgmr.msra.gmra.mrb[0].mxu1 %vm184_vm0, %v164_v12  ;;  %715 = vmatpush1.bf16.msra.mxu0 %v714_v22 }
  0x43   : > { %719 = vmatpush1.bf16.msra.mxu1 %v718_v25  ;;  %267 = vmatprep.mubr.f32.mxu0 %v875_v0  ;;  %p812_p1 = por %p811_p10, %p810_p4 }
  0x44   : > { %356 = vmatprep.mubr.f32.mxu1 %v875_v0 }
  0x45   : > { %682 = vmatmul.mubr.msk.f32.gmra.mrb[2].mxu0 %vm184_vm0, %v165_v26  ;;  %p813_p3 = pnand %p812_p1, %p806_p13 }
  0x46   : > { %686 = vmatmul.mubr.msk.f32.gmra.mrb[2].mxu1 %vm184_vm0, %v165_v26  ;;  %273 = vmatprep.mubr.f32.mxu0 %v875_v0 }
  0x47   : > { %362 = vmatprep.mubr.f32.mxu1 %v875_v0 }
  0x49   : > { %683 = vmatmul.mubr.msk.f32.gmra.mrb[4].mxu0 %vm184_vm0, %v166_v27 }
  0x4a   : > { %687 = vmatmul.mubr.msk.f32.gmra.mrb[4].mxu1 %vm184_vm0, %v166_v27  ;;  %279 = vmatprep.mubr.f32.mxu0 %v875_v0 }
  0x4b   : > { %368 = vmatprep.mubr.f32.mxu1 %v875_v0 }
  0x4d   : > { %684 = vmatmul.mubr.msk.f32.gmra.mrb[6].mxu0 %vm184_vm0, %v167_v28 }
  0x4e   : > { %688 = vmatmul.mubr.msk.f32.gmra.mrb[6].mxu1 %vm184_vm0, %v167_v28  ;;  %439 = vmatprep.mubr.f32.mxu0 %v875_v0 }
  0x4f   : > { %528 = vmatprep.mubr.f32.mxu1 %v875_v0 }
  0x51   : > { %689 = vmatmul.mubr.msk.f32.vlgmr.msra.gmra.mrb[8].mxu0 %vm184_vm0, %v164_v12 }
  0x52   : > { %693 = vmatmul.mubr.msk.f32.vlgmr.msra.gmra.mrb[8].mxu1 %vm184_vm0, %v164_v12  ;;  %445 = vmatprep.mubr.f32.mxu0 %v875_v0 }
  0x53   : > { %534 = vmatprep.mubr.f32.mxu1 %v875_v0 }
  0x55   : > { %690 = vmatmul.mubr.msk.f32.gmra.mrb[10].mxu0 %vm184_vm0, %v165_v26 }
  0x56   : > { %694 = vmatmul.mubr.msk.f32.gmra.mrb[10].mxu1 %vm184_vm0, %v165_v26  ;;  %451 = vmatprep.mubr.f32.mxu0 %v875_v0 }
  0x57   : > { %540 = vmatprep.mubr.f32.mxu1 %v875_v0 }
  0x59   : > { %691 = vmatmul.mubr.msk.f32.gmra.mrb[12].mxu0 %vm184_vm0, %v166_v27 }
  0x5a   : > { %695 = vmatmul.mubr.msk.f32.gmra.mrb[12].mxu1 %vm184_vm0, %v166_v27  ;;  %457 = vmatprep.mubr.f32.mxu0 %v875_v0 }
  0x5b   : > { %546 = vmatprep.mubr.f32.mxu1 %v875_v0 }
  0x5d   : > { %692 = vmatmul.mubr.msk.f32.gmra.mrb[14].mxu0 %vm184_vm0, %v167_v28 }
  0x5e   : > { %696 = vmatmul.mubr.msk.f32.gmra.mrb[14].mxu1 %vm184_vm0, %v167_v28 }
 0x114   : > { %v263_v29 = vpop.f32.mrb[0].mxu0 }
 0x115   : > { %553 = vst [vmem:[%s1072_s19] sm:$0xff] %v263_v29  ;;  %v352_v30 = vpop.f32.mrb[0].mxu1  ;;  %v265_v31 = vpop.f32.mrb[1].mxu0 }
 0x116   : > { %555 = vst [vmem:[%s1072_s19 + $0x10] sm:$0xff] %v352_v30  ;;  %554 = vst [vmem:[%s1072_s19 + $0x8] sm:$0xff] %v265_v31  ;;  %v354_v32 = vpop.f32.mrb[1].mxu1 }
 0x117   : > { %556 = vst [vmem:[%s1072_s19 + $0x18] sm:$0xff] %v354_v32 }
 0x118   : > { %v269_v33 = vpop.f32.mrb[2].mxu0 }
 0x119   : > { %561 = vst [vmem:[%s1072_s19 + $0x40] sm:$0xff] %v269_v33  ;;  %v358_v34 = vpop.f32.mrb[2].mxu1  ;;  %v271_v35 = vpop.f32.mrb[3].mxu0 }
 0x11a   : > { %563 = vst [vmem:[%s1072_s19 + $0x50] sm:$0xff] %v358_v34  ;;  %562 = vst [vmem:[%s1072_s19 + $0x48] sm:$0xff] %v271_v35  ;;  %v360_v36 = vpop.f32.mrb[3].mxu1 }
 0x11b   : > { %564 = vst [vmem:[%s1072_s19 + $0x58] sm:$0xff] %v360_v36 }
 0x11c   : > { %v275_v37 = vpop.f32.mrb[4].mxu0 }
 0x11d   : > { %569 = vst [vmem:[%s1072_s19 + $0x80] sm:$0xff] %v275_v37  ;;  %v364_v38 = vpop.f32.mrb[4].mxu1  ;;  %v277_v39 = vpop.f32.mrb[5].mxu0 }
 0x11e   : > { %571 = vst [vmem:[%s1072_s19 + $0x90] sm:$0xff] %v364_v38  ;;  %570 = vst [vmem:[%s1072_s19 + $0x88] sm:$0xff] %v277_v39  ;;  %v366_v40 = vpop.f32.mrb[5].mxu1 }
 0x11f   : > { %572 = vst [vmem:[%s1072_s19 + $0x98] sm:$0xff] %v366_v40 }
 0x120   : > { %v281_v41 = vpop.f32.mrb[6].mxu0 }
 0x121   : > { %577 = vst [vmem:[%s1072_s19 + $0xc0] sm:$0xff] %v281_v41  ;;  %v370_v42 = vpop.f32.mrb[6].mxu1  ;;  %v283_v43 = vpop.f32.mrb[7].mxu0 }
 0x122   : > { %579 = vst [vmem:[%s1072_s19 + $0xd0] sm:$0xff] %v370_v42  ;;  %578 = vst [vmem:[%s1072_s19 + $0xc8] sm:$0xff] %v283_v43  ;;  %v372_v44 = vpop.f32.mrb[7].mxu1 }
 0x123   : > { %580 = vst [vmem:[%s1072_s19 + $0xd8] sm:$0xff] %v372_v44 }
 0x124   : > { %v441_v45 = vpop.f32.mrb[8].mxu0 }
 0x125   : > { %557 = vst [vmem:[%s1072_s19 + $0x20] sm:$0xff] %v441_v45  ;;  %v530_v46 = vpop.f32.mrb[8].mxu1  ;;  %v443_v47 = vpop.f32.mrb[9].mxu0 }
 0x126   : > { %559 = vst [vmem:[%s1072_s19 + $0x30] sm:$0xff] %v530_v46  ;;  %558 = vst [vmem:[%s1072_s19 + $0x28] sm:$0xff] %v443_v47  ;;  %v532_v48 = vpop.f32.mrb[9].mxu1 }
 0x127   : > { %560 = vst [vmem:[%s1072_s19 + $0x38] sm:$0xff] %v532_v48 }
 0x128   : > { %v447_v49 = vpop.f32.mrb[10].mxu0 }
 0x129   : > { %565 = vst [vmem:[%s1072_s19 + $0x60] sm:$0xff] %v447_v49  ;;  %v536_v50 = vpop.f32.mrb[10].mxu1  ;;  %v449_v51 = vpop.f32.mrb[11].mxu0 }
 0x12a   : > { %567 = vst [vmem:[%s1072_s19 + $0x70] sm:$0xff] %v536_v50  ;;  %566 = vst [vmem:[%s1072_s19 + $0x68] sm:$0xff] %v449_v51  ;;  %v538_v52 = vpop.f32.mrb[11].mxu1 }
 0x12b   : > { %568 = vst [vmem:[%s1072_s19 + $0x78] sm:$0xff] %v538_v52 }
 0x12c   : > { %v453_v53 = vpop.f32.mrb[12].mxu0 }
 0x12d   : > { %573 = vst [vmem:[%s1072_s19 + $0xa0] sm:$0xff] %v453_v53  ;;  %v542_v54 = vpop.f32.mrb[12].mxu1  ;;  %v455_v55 = vpop.f32.mrb[13].mxu0 }
 0x12e   : > { %575 = vst [vmem:[%s1072_s19 + $0xb0] sm:$0xff] %v542_v54  ;;  %574 = vst [vmem:[%s1072_s19 + $0xa8] sm:$0xff] %v455_v55  ;;  %v544_v56 = vpop.f32.mrb[13].mxu1 }
 0x12f   : > { %576 = vst [vmem:[%s1072_s19 + $0xb8] sm:$0xff] %v544_v56 }
 0x130   : > { %v459_v57 = vpop.f32.mrb[14].mxu0 }
 0x131   : > { %581 = vst [vmem:[%s1072_s19 + $0xe0] sm:$0xff] %v459_v57  ;;  %v548_v58 = vpop.f32.mrb[14].mxu1  ;;  %v461_v59 = vpop.f32.mrb[15].mxu0 }
 0x132   : > { %583 = vst [vmem:[%s1072_s19 + $0xf0] sm:$0xff] %v548_v58  ;;  %582 = vst [vmem:[%s1072_s19 + $0xe8] sm:$0xff] %v461_v59  ;;  %v550_v60 = vpop.f32.mrb[15].mxu1 }
 0x133   : > { %584 = vst [vmem:[%s1072_s19 + $0xf8] sm:$0xff] %v550_v60 }
 0x134   : > { %816 = shalt.err (!%p813_p3)
}
 0x135   : > { %s817_s28 = scalar_lea.hbm %s1107_s27, 4096  ;;  %s821_s4 = scalar_lea.hbm %s1159_s2, 8192 }
 0x136   : > { %p818_p5 = scmp.ne.s32.totalorder %s1107_s27, %s817_s28  ;;  %p822_p9 = scmp.lt.u32.totalorder %s1107_s27, %s1159_s2 }
 0x137   : > { %p823_p0 = scmp.lt.u32.totalorder %s821_s4, %s817_s28  ;;  %p825_p6 = scmp.lt.u32.totalorder %s817_s28, %s1107_s27 }
 0x138   : > { %p819_p7 = pnand %p818_p5, %p1167_p11 }
 0x139   : > { %p824_p2 = por %p823_p0, %p822_p9 }
 0x13a   : > { %p820_p8 = pneg %p819_p7 }
 0x13b   : > { %p826_p12 = por %p825_p6, %p824_p2 }
 0x13d   : > { %p827_p13 = pnand %p826_p12, %p820_p8 }
 0x13f   : > { %830 = shalt.err (!%p827_p13)
}
 0x140   : > { %s877_s16 = smov 1024   ;;  %s878_s17 = smov 2048  }
 0x141   : > { %s879_s19 = smov 64  }
 0x142   : > { %722 = dma.vmem_to_hbm [thread:$0]  (%p1167_p11), %s1109_s24, 4096, %s1107_s27, %s586_s13, %s877_s16, %s878_s17, %s879_s19  }
 0x143 PF: > { %s614_s23 = sand.u32 1, %s857_s9   ;;  %p1168_p4 = scmp.ne.s32.totalorder %s1164_s22, 0 }
 0x144   : > { %p1169_p10 = scmp.ge.s32.totalorder %s869_s12, 2  ;;  %s615_s25 = scalar_lea.sflag [#allocation4], %s614_s23 }
 0x146   : > { %p729_p1 = pnand %p1169_p10, %p1168_p4 }
 0x148   : > { %852 = dma.done.wait (!%p729_p1), %s615_s25, 4096  }
 0x149   : > { %854 = vsyncadd (!%p729_p1), %s615_s25, 4294963200  ;;  %p15_p3 = scmp.ge.s32.totalorder %s920_s15, 4   ;;  %s1170_s9 = smov %s861_s10 }
 0x14a   : > { %s1171_s10 = smov %s865_s11  ;;  %s1172_s11 = smov %s932_s18 }
 0x14b   : > { %s1173_s12 = smov %s920_s15  ;;  %17 = sbr.rel (!%p15_p3) target bundleno = 5 (0x5), region = 73 }
 0x152   :  { %620 = vsyncpa [#allocation3], 1 }
 0x153   :  { %622 = vsyncpa [#allocation3 + $0x1], 1 }
 0x154   :  { %623 = vsyncpa [#allocation4], 1 }
 0x155   :  { %625 = vsyncpa [#allocation4 + $0x1], 1 }

</bundles_post_ra>
